<compile_context>
chip_gen: v5e
topology: v5e:2x2
jax: 0.10.0
libtpu: 0.0.40
codegen_flags: <defaults>
</compile_context>

<pallas_src>
import functools
import math

import jax
import jax.numpy as jnp
from jax.experimental import pallas as pl
from jax.experimental.pallas import tpu as pltpu


# ---------------- Stage 1: GRU weight evolution + X @ W_new ------------------
def evolve_weight_kernel(x_ref, xt_ref, h0_ref, wi_ref, wh_ref, bias_ref,
                         xw_ref):
    F = xt_ref.shape[1]
    xt = xt_ref[...]                      # [F, F]  bf16 pooled features
    h0 = h0_ref[...]                      # [F, F]  f32  initial GCN weight

    # Fused GRU gate matmuls: 2 MXU pushes instead of 6 (gate order r | z | n).
    gi = jnp.dot(xt, wi_ref[...], preferred_element_type=jnp.float32)   # [F, 3F]
    gh = jnp.dot(h0.astype(jnp.bfloat16), wh_ref[...],
                 preferred_element_type=jnp.float32)                    # [F, 3F]

    bias = bias_ref[...]                  # [1, 4F] f32: [bir+bhr | biz+bhz | bin | bhn]
    b_r = bias[:, 0 * F:1 * F]
    b_z = bias[:, 1 * F:2 * F]
    b_in = bias[:, 2 * F:3 * F]
    b_hn = bias[:, 3 * F:4 * F]

    r = jax.nn.sigmoid(gi[:, 0 * F:1 * F] + gh[:, 0 * F:1 * F] + b_r)
    z = jax.nn.sigmoid(gi[:, 1 * F:2 * F] + gh[:, 1 * F:2 * F] + b_z)
    n = jnp.tanh(gi[:, 2 * F:3 * F] + b_in + r * (gh[:, 2 * F:3 * F] + b_hn))
    w_new = (1.0 - z) * n + z * h0        # evolved GCN weight, f32 [F, F]

    # X @ W_new (bf16 operands, f32 accumulate) -> consumed by stage 2.
    xw = jnp.dot(x_ref[...], w_new.astype(jnp.bfloat16),
                 preferred_element_type=jnp.float32)                    # [N, F]
    xw_ref[...] = xw.astype(xw_ref.dtype)


# -------- Stage 2: row-tiled A_hat @ XW, ReLU, Linear(F, 1) readout ----------
def gcn_readout_kernel(a_ref, xw_ref, wlin_ref, blin_ref, out_ref):
    # One (tm, N) row tile of A_hat against the resident [N, F] XW.
    h = jnp.dot(a_ref[...], xw_ref[...],
                preferred_element_type=jnp.float32)                     # [tm, F]
    h = jnp.maximum(h, 0.0)
    # Linear(F, 1) as VPU multiply + lane reduction (keeps it off the MXU).
    out_ref[...] = (jnp.sum(h * wlin_ref[...], axis=-1, keepdims=True)
                    + blin_ref[...])                                    # [tm, 1]


# ------------------------------- JAX glue ------------------------------------
def gcn_norm_dense(edge_index, edge_weight, num_nodes):
    """Dense normalized adjacency matching PyG gcn_norm:
    add_remaining_self_loops (only for nodes lacking one) + symmetric norm.
    A_hat[dst, src] collects messages from source src to target dst."""
    row, col = edge_index[0], edge_index[1]
    is_loop = (row == col)
    has_loop = (jnp.zeros((num_nodes,), jnp.int32)
                .at[row].add(is_loop.astype(jnp.int32))) > 0
    loop = jnp.arange(num_nodes, dtype=edge_index.dtype)
    loop_w = jnp.where(has_loop, 0.0, 1.0).astype(edge_weight.dtype)

    row = jnp.concatenate([row, loop])
    col = jnp.concatenate([col, loop])
    ew = jnp.concatenate([edge_weight, loop_w])

    deg = jnp.zeros((num_nodes,), edge_weight.dtype).at[col].add(ew)
    dinv = jnp.where(deg > 0, jax.lax.rsqrt(deg), 0.0)
    norm = dinv[row] * ew * dinv[col]

    a_hat = jnp.zeros((num_nodes, num_nodes), edge_weight.dtype)
    a_hat = a_hat.at[col, row].add(norm)
    return a_hat


def init_params(key, node_count, dim_in):
    """Deterministic parameter init mirroring the PyTorch module's shapes."""
    F = dim_in
    ks = jax.random.split(key, 8)
    s = 1.0 / math.sqrt(F)
    u = lambda k, shape: jax.random.uniform(k, shape, jnp.float32, -s, s)

    pool_w = u(ks[0], (1, F))                 # TopKPooling projection p
    h0 = u(ks[1], (F, F))                     # EvolveGCNH.initial_weight
    w_ih = u(ks[2], (3 * F, F))               # GRU weight_ih_l0 (rows: r | z | n)
    w_hh = u(ks[3], (3 * F, F))               # GRU weight_hh_l0
    b_ih = u(ks[4], (3 * F,))
    b_hh = u(ks[5], (3 * F,))
    w_lin = u(ks[6], (1, F))                  # nn.Linear(F, 1).weight
    b_lin = u(ks[7], (1,))

    # Fuse per-gate weights into single [F, 3F] matmul operands (bf16).
    wi_fused = w_ih.T.astype(jnp.bfloat16)    # columns: W_ir.T | W_iz.T | W_in.T
    wh_fused = w_hh.T.astype(jnp.bfloat16)

    # Pre-sum the r/z biases (always added together) and pack everything into
    # one [1, 4F] row: [bir+bhr | biz+bhz | bin | bhn].
    b_r = b_ih[:F] + b_hh[:F]
    b_z = b_ih[F:2 * F] + b_hh[F:2 * F]
    bias = jnp.concatenate([b_r, b_z, b_ih[2 * F:], b_hh[2 * F:]]
                           ).reshape(1, 4 * F)

    return dict(pool_w=pool_w, h0=h0,
                wi=wi_fused, wh=wh_fused, bias=bias,
                wlin=w_lin, blin=b_lin.reshape(1, 1))


def temporal_gnn_forward(params, x, edge_index, edge_weight, *, row_tile=None):
    N, F = x.shape

    # --- TopKPooling (data-dependent top-k select + gather stays in JAX glue) ---
    p = params["pool_w"]
    score = jnp.tanh((x @ p[0]) / jnp.linalg.norm(p))          # [N]
    k = min(F, N)                                              # ratio = F/N -> k = F
    # TODO(synk): jax.lax.top_k tie-breaking can differ from torch.topk on ties.
    top_scores, perm = jax.lax.top_k(score, k)
    x_tilde = x[perm] * top_scores[:, None]                    # [F, F]

    # --- dense normalized adjacency (scatter build stays in JAX glue) ---
    a_hat = gcn_norm_dense(edge_index, edge_weight, N)         # [N, N]
    # TODO(synk): for large sparse graphs replace dense A_hat with a CSR gather
    # SpMM (PrefetchScalarGridSpec + manual DMA) instead of an N x N matmul.

    x_bf = x.astype(jnp.bfloat16)
    a_bf = a_hat.astype(jnp.bfloat16)

    vmem = pl.BlockSpec(memory_space=pltpu.MemorySpace.VMEM)

    # ---- Stage 1: GRU weight evolution + X @ W_new (single small call) ----
    gru_cost = pl.CostEstimate(
        flops=int(2 * F * F * 3 * F * 2 + 2 * N * F * F + 12 * F * F),
        transcendentals=int(3 * F * F),
        bytes_accessed=int(2 * (N * F + F * F + 2 * F * 3 * F + N * F)
                           + 4 * (F * F + 4 * F)))
    xw = pl.pallas_call(
        evolve_weight_kernel,
        out_shape=jax.ShapeDtypeStruct((N, F), jnp.bfloat16),
        in_specs=[vmem] * 6,
        out_specs=vmem,
        cost_estimate=gru_cost,
    )(x_bf, x_tilde.astype(jnp.bfloat16), params["h0"],
      params["wi"], params["wh"], params["bias"])

    # ---- Stage 2: row-tiled A_hat @ XW + ReLU + Linear(F, 1) ----
    if row_tile is None:
        row_tile = min(N, 512)
    if N % row_tile != 0 or (row_tile % 8 != 0 and row_tile != N):
        row_tile = N
    grid = (N // row_tile,)

    gcn_cost = pl.CostEstimate(
        flops=int(2 * N * N * F + 3 * N * F),
        transcendentals=0,
        bytes_accessed=int(2 * (N * N + N * F) + 4 * (N + F + 1)))
    out = pl.pallas_call(
        gcn_readout_kernel,
        out_shape=jax.ShapeDtypeStruct((N, 1), jnp.float32),
        grid=grid,
        in_specs=[
            pl.BlockSpec((row_tile, N), lambda i: (i, 0)),   # A_hat row tile
            pl.BlockSpec((N, F), lambda i: (0, 0)),          # XW (resident)
            pl.BlockSpec((1, F), lambda i: (0, 0)),          # linear weight row
            pl.BlockSpec((1, 1), lambda i: (0, 0)),          # linear bias
        ],
        out_specs=pl.BlockSpec((row_tile, 1), lambda i: (i, 0)),
        compiler_params=pltpu.CompilerParams(
            dimension_semantics=("parallel",),
            vmem_limit_bytes=32 * 1024 * 1024),
        cost_estimate=gcn_cost,
    )(a_bf, xw, params["wlin"], params["blin"])
    return out


# --------------------------------- main --------------------------------------
if __name__ == "__main__":
    node_count, dim_in = 64, 16

    key = jax.random.PRNGKey(0)
    kx, kw, kp = jax.random.split(key, 3)

    # node features
    x = jax.random.normal(kx, (node_count, dim_in), dtype=jnp.float32)

    # bidirectional ring graph (no self-loops), with edge weights
    src = jnp.arange(node_count, dtype=jnp.int32)
    dst = (src + 1) % node_count
    edge_index = jnp.stack([jnp.concatenate([src, dst]),
                            jnp.concatenate([dst, src])], axis=0)        # [2, 2N]
    edge_weight = jax.random.uniform(kw, (edge_index.shape[1],),
                                     jnp.float32, 0.5, 1.5)

    params = init_params(kp, node_count, dim_in)

    fwd = jax.jit(functools.partial(temporal_gnn_forward, row_tile=16))
    out = fwd(params, x, edge_index, edge_weight)
    out = jax.block_until_ready(out)

    assert out.shape == (node_count, 1) and out.dtype == jnp.float32
    assert bool(jnp.all(jnp.isfinite(out)))
    print("KERNEL_OK")
</pallas_src>

<mosaic_0001>
module attributes {stable_mosaic.version = 11 : i64} {
  func.func @gcn_readout_kernel(%arg0: i32, %arg1: memref<16x64xbf16, #tpu.memory_space<vmem>>, %arg2: memref<64x16xbf16, #tpu.memory_space<vmem>>, %arg3: memref<1x16xf32, #tpu.memory_space<vmem>>, %arg4: memref<1x1xf32, #tpu.memory_space<vmem>>, %arg5: memref<16x1xf32, #tpu.memory_space<vmem>>) attributes {dimension_semantics = [#tpu.dimension_semantics<parallel>], iteration_bounds = array<i64: 4>, scalar_prefetch = 0 : i64, scratch_operands = 0 : i64, tpu.core_type = #tpu.core_type<tc>, window_params = [{transform_indices = @transform_0, window_bounds = array<i64: 16, 64>}, {pipeline_mode = #tpu.pipeline_mode<synchronous>, transform_indices = @transform_1, window_bounds = array<i64: 64, 16>}, {pipeline_mode = #tpu.pipeline_mode<synchronous>, transform_indices = @transform_2, window_bounds = array<i64: 1, 16>}, {pipeline_mode = #tpu.pipeline_mode<synchronous>, transform_indices = @transform_3, window_bounds = array<i64: 1, 1>}, {transform_indices = @transform_4, window_bounds = array<i64: 16, 1>}]} {
    %c0 = arith.constant 0 : index
    %c0_0 = arith.constant 0 : index
    %0 = vector.load %arg1[%c0, %c0_0] : memref<16x64xbf16, #tpu.memory_space<vmem>>, vector<16x64xbf16>
    %c0_1 = arith.constant 0 : index
    %c0_2 = arith.constant 0 : index
    %1 = vector.load %arg2[%c0_1, %c0_2] : memref<64x16xbf16, #tpu.memory_space<vmem>>, vector<64x16xbf16>
    %cst = arith.constant dense<0.000000e+00> : vector<16x16xf32>
    %2 = tpu.matmul %0, %1, %cst {dimension_numbers = #tpu.dot_dimension_numbers<[1], [0], [0], [1], [0, 0, 1, 1], [], []>} : vector<16x64xbf16>, vector<64x16xbf16>, vector<16x16xf32> -> vector<16x16xf32>
    %cst_3 = arith.constant 0.000000e+00 : f32
    %3 = vector.broadcast %cst_3 : f32 to vector<16x16xf32>
    %4 = arith.maximumf %2, %3 : vector<16x16xf32>
    %c0_4 = arith.constant 0 : index
    %c0_5 = arith.constant 0 : index
    %5 = vector.load %arg3[%c0_4, %c0_5] : memref<1x16xf32, #tpu.memory_space<vmem>>, vector<1x16xf32>
    %6 = vector.broadcast %5 : vector<1x16xf32> to vector<16x16xf32>
    %7 = arith.mulf %4, %6 : vector<16x16xf32>
    %cst_6 = arith.constant dense<0.000000e+00> : vector<16xf32>
    %8 = vector.multi_reduction <add>, %7, %cst_6 [1] : vector<16x16xf32> to vector<16xf32>
    %9 = vector.shape_cast %8 : vector<16xf32> to vector<16x1xf32>
    %c0_7 = arith.constant 0 : index
    %c0_8 = arith.constant 0 : index
    %10 = vector.load %arg4[%c0_7, %c0_8] : memref<1x1xf32, #tpu.memory_space<vmem>>, vector<1x1xf32>
    %11 = vector.broadcast %10 : vector<1x1xf32> to vector<16x1xf32>
    %12 = arith.addf %9, %11 : vector<16x1xf32>
    %c0_9 = arith.constant 0 : index
    %c0_10 = arith.constant 0 : index
    %13 = vector.load %arg5[%c0_9, %c0_10] : memref<16x1xf32, #tpu.memory_space<vmem>>, vector<16x1xf32>
    tpu.vector_store %arg5[%c0_9, %c0_10], %12 {strides = array<i32>} : memref<16x1xf32, #tpu.memory_space<vmem>>, vector<16x1xf32>,
    return
  }
  func.func @transform_0(%arg0: i32) -> (i32, i32) {
    %c0_i32 = arith.constant 0 : i32
    %c0_i32_0 = arith.constant 0 : i32
    return %arg0, %c0_i32 : i32, i32
  }
  func.func @transform_1(%arg0: i32) -> (i32, i32) {
    %c0_i32 = arith.constant 0 : i32
    %c0_i32_0 = arith.constant 0 : i32
    %c0_i32_1 = arith.constant 0 : i32
    return %c0_i32, %c0_i32_0 : i32, i32
  }
  func.func @transform_2(%arg0: i32) -> (i32, i32) {
    %c0_i32 = arith.constant 0 : i32
    %c0_i32_0 = arith.constant 0 : i32
    %c0_i32_1 = arith.constant 0 : i32
    return %c0_i32, %c0_i32_0 : i32, i32
  }
  func.func @transform_3(%arg0: i32) -> (i32, i32) {
    %c0_i32 = arith.constant 0 : i32
    %c0_i32_0 = arith.constant 0 : i32
    %c0_i32_1 = arith.constant 0 : i32
    return %c0_i32, %c0_i32_0 : i32, i32
  }
  func.func @transform_4(%arg0: i32) -> (i32, i32) {
    %c0_i32 = arith.constant 0 : i32
    %c0_i32_0 = arith.constant 0 : i32
    return %arg0, %c0_i32 : i32, i32
  }
}

module attributes {stable_mosaic.version = 11 : i64} {
  func.func @evolve_weight_kernel(%arg0: memref<64x16xbf16, #tpu.memory_space<vmem>>, %arg1: memref<16x16xbf16, #tpu.memory_space<vmem>>, %arg2: memref<16x16xf32, #tpu.memory_space<vmem>>, %arg3: memref<16x48xbf16, #tpu.memory_space<vmem>>, %arg4: memref<16x48xbf16, #tpu.memory_space<vmem>>, %arg5: memref<1x64xf32, #tpu.memory_space<vmem>>, %arg6: memref<64x16xbf16, #tpu.memory_space<vmem>>) attributes {dimension_semantics = [], scalar_prefetch = 0 : i64, scratch_operands = 0 : i64, tpu.core_type = #tpu.core_type<tc>} {
    %c0 = arith.constant 0 : index
    %c0_0 = arith.constant 0 : index
    %0 = vector.load %arg1[%c0, %c0_0] : memref<16x16xbf16, #tpu.memory_space<vmem>>, vector<16x16xbf16>
    %c0_1 = arith.constant 0 : index
    %c0_2 = arith.constant 0 : index
    %1 = vector.load %arg2[%c0_1, %c0_2] : memref<16x16xf32, #tpu.memory_space<vmem>>, vector<16x16xf32>
    %c0_3 = arith.constant 0 : index
    %c0_4 = arith.constant 0 : index
    %2 = vector.load %arg3[%c0_3, %c0_4] : memref<16x48xbf16, #tpu.memory_space<vmem>>, vector<16x48xbf16>
    %cst = arith.constant dense<0.000000e+00> : vector<16x48xf32>
    %3 = tpu.matmul %0, %2, %cst {dimension_numbers = #tpu.dot_dimension_numbers<[1], [0], [0], [1], [0, 0, 1, 1], [], []>} : vector<16x16xbf16>, vector<16x48xbf16>, vector<16x48xf32> -> vector<16x48xf32>
    %4 = arith.truncf %1 : vector<16x16xf32> to vector<16x16xbf16>
    %c0_5 = arith.constant 0 : index
    %c0_6 = arith.constant 0 : index
    %5 = vector.load %arg4[%c0_5, %c0_6] : memref<16x48xbf16, #tpu.memory_space<vmem>>, vector<16x48xbf16>
    %cst_7 = arith.constant dense<0.000000e+00> : vector<16x48xf32>
    %6 = tpu.matmul %4, %5, %cst_7 {dimension_numbers = #tpu.dot_dimension_numbers<[1], [0], [0], [1], [0, 0, 1, 1], [], []>} : vector<16x16xbf16>, vector<16x48xbf16>, vector<16x48xf32> -> vector<16x48xf32>
    %c0_8 = arith.constant 0 : index
    %c0_9 = arith.constant 0 : index
    %7 = vector.load %arg5[%c0_8, %c0_9] : memref<1x64xf32, #tpu.memory_space<vmem>>, vector<1x64xf32>
    %8 = vector.extract_strided_slice %7 {offsets = [0, 0], sizes = [1, 16], strides = [1, 1]} : vector<1x64xf32> to vector<1x16xf32>
    %9 = vector.extract_strided_slice %7 {offsets = [0, 16], sizes = [1, 16], strides = [1, 1]} : vector<1x64xf32> to vector<1x16xf32>
    %10 = vector.extract_strided_slice %7 {offsets = [0, 32], sizes = [1, 16], strides = [1, 1]} : vector<1x64xf32> to vector<1x16xf32>
    %11 = vector.extract_strided_slice %7 {offsets = [0, 48], sizes = [1, 16], strides = [1, 1]} : vector<1x64xf32> to vector<1x16xf32>
    %12 = vector.extract_strided_slice %3 {offsets = [0, 0], sizes = [16, 16], strides = [1, 1]} : vector<16x48xf32> to vector<16x16xf32>
    %13 = vector.extract_strided_slice %6 {offsets = [0, 0], sizes = [16, 16], strides = [1, 1]} : vector<16x48xf32> to vector<16x16xf32>
    %14 = arith.addf %12, %13 : vector<16x16xf32>
    %15 = vector.broadcast %8 : vector<1x16xf32> to vector<16x16xf32>
    %16 = arith.addf %14, %15 : vector<16x16xf32>
    %17 = arith.negf %16 : vector<16x16xf32>
    %18 = math.exp %17 : vector<16x16xf32>
    %cst_10 = arith.constant 1.000000e+00 : f32
    %19 = vector.broadcast %cst_10 : f32 to vector<16x16xf32>
    %20 = arith.addf %19, %18 : vector<16x16xf32>
    %21 = arith.divf %19, %20 : vector<16x16xf32>
    %22 = vector.extract_strided_slice %3 {offsets = [0, 16], sizes = [16, 16], strides = [1, 1]} : vector<16x48xf32> to vector<16x16xf32>
    %23 = vector.extract_strided_slice %6 {offsets = [0, 16], sizes = [16, 16], strides = [1, 1]} : vector<16x48xf32> to vector<16x16xf32>
    %24 = arith.addf %22, %23 : vector<16x16xf32>
    %25 = vector.broadcast %9 : vector<1x16xf32> to vector<16x16xf32>
    %26 = arith.addf %24, %25 : vector<16x16xf32>
    %27 = arith.negf %26 : vector<16x16xf32>
    %28 = math.exp %27 : vector<16x16xf32>
    %cst_11 = arith.constant 1.000000e+00 : f32
    %29 = vector.broadcast %cst_11 : f32 to vector<16x16xf32>
    %30 = arith.addf %29, %28 : vector<16x16xf32>
    %31 = arith.divf %29, %30 : vector<16x16xf32>
    %32 = vector.extract_strided_slice %3 {offsets = [0, 32], sizes = [16, 16], strides = [1, 1]} : vector<16x48xf32> to vector<16x16xf32>
    %33 = vector.broadcast %10 : vector<1x16xf32> to vector<16x16xf32>
    %34 = arith.addf %32, %33 : vector<16x16xf32>
    %35 = vector.extract_strided_slice %6 {offsets = [0, 32], sizes = [16, 16], strides = [1, 1]} : vector<16x48xf32> to vector<16x16xf32>
    %36 = vector.broadcast %11 : vector<1x16xf32> to vector<16x16xf32>
    %37 = arith.addf %35, %36 : vector<16x16xf32>
    %38 = arith.mulf %21, %37 : vector<16x16xf32>
    %39 = arith.addf %34, %38 : vector<16x16xf32>
    %40 = math.tanh %39 : vector<16x16xf32>
    %cst_12 = arith.constant 1.000000e+00 : f32
    %41 = vector.broadcast %cst_12 : f32 to vector<16x16xf32>
    %42 = arith.subf %41, %31 : vector<16x16xf32>
    %43 = arith.mulf %42, %40 : vector<16x16xf32>
    %44 = arith.mulf %31, %1 : vector<16x16xf32>
    %45 = arith.addf %43, %44 : vector<16x16xf32>
    %c0_13 = arith.constant 0 : index
    %c0_14 = arith.constant 0 : index
    %46 = vector.load %arg0[%c0_13, %c0_14] : memref<64x16xbf16, #tpu.memory_space<vmem>>, vector<64x16xbf16>
    %47 = arith.truncf %45 : vector<16x16xf32> to vector<16x16xbf16>
    %cst_15 = arith.constant dense<0.000000e+00> : vector<64x16xf32>
    %48 = tpu.matmul %46, %47, %cst_15 {dimension_numbers = #tpu.dot_dimension_numbers<[1], [0], [0], [1], [0, 0, 1, 1], [], []>} : vector<64x16xbf16>, vector<16x16xbf16>, vector<64x16xf32> -> vector<64x16xf32>
    %49 = arith.truncf %48 : vector<64x16xf32> to vector<64x16xbf16>
    %c0_16 = arith.constant 0 : index
    %c0_17 = arith.constant 0 : index
    %50 = vector.load %arg6[%c0_16, %c0_17] : memref<64x16xbf16, #tpu.memory_space<vmem>>, vector<64x16xbf16>
    tpu.vector_store %arg6[%c0_16, %c0_17], %49 {strides = array<i32>} : memref<64x16xbf16, #tpu.memory_space<vmem>>, vector<64x16xbf16>,
    return
  }
}

</mosaic_0001>

<bundles_post_ra>
// kernel: temporal_gnn_forward.3
= control target key start
LH: loop header
LB: loop body
LE: loop exit
PB: predicated region body
PF: predicated region fallthrough
CT: control target
= control target key end

     0   :  { %s424_s17 = smov 0   ;;  %s456_s0 = inlined_call_operand.vmem [shape: bf16[64,64], index: 0, kind: input, shape index: {}]   ;;  %s457_s1 = inlined_call_operand.vmem [shape: bf16[64,16], index: 1, kind: input, shape index: {}]   ;;  %s458_s2 = inlined_call_operand.vmem [shape: f32[1,16], index: 2, kind: input, shape index: {}]   ;;  %s459_s3 = inlined_call_operand.<no memory space> [shape: f32[1,1], index: 3, kind: input, shape index: {}]   ;;  %s460_s4 = inlined_call_operand.vmem [shape: f32[64,1], index: 4, kind: output, shape index: {}]  }
   0x1   :  { %v9_v0 = vstv %s459_s3 }
   0x2   :  { %10 = vst [vmem:[#allocation2] sm:$0x1] %v9_v0 }
   0x3 LB: > { %s341_s18 = sadd.s32 4294967295, %s394_s17   ;;  %p345_p0 = scmp.ge.s32.totalorder %s394_s17, 1  ;;  %s394_s17 = sphi %s424_s17, %s16_s17  }
   0x4   : > { %p165_p1 = scmp.lt.s32.totalorder %s394_s17, 5 }
   0x6   : > { %p166_p2 = pnand %p345_p0, %p165_p1 }
   0x7   : > { %s346_s3 = sshll.u32 (!%p166_p2), %s341_s18, 1 }
   0x8   : > { %169 = sbr.rel (%p166_p2) target bundleno = 287 (0x11f), region = 36  ;;  %p192_p3 = scmp.lt.s32.totalorder (!%p166_p2), %s346_s3, 7 }
   0xd   : > { %v377_v1 = vld [vmem:[%s457_s1 + $0x18] sm:$0xff]  ;;  %v376_v2 = vld [vmem:[%s457_s1 + $0x10] sm:$0xff]  ;;  %s462_s3 = smov (!%p192_p3, %s346_s3), 7  ;;  %v375_v3 = vld [vmem:[%s457_s1 + $0x8] sm:$0xff]  ;;  %vm243_vm0 = vcmask 523264   ;;  %vm269_vm1 = vcmask 130048  }
   0xe   : > { %251 = vmatpush.bf16.msra.mxu0 %v377_v1  ;;  %s347_s25 = sshll.u32 %s462_s3, 2  ;;  %v374_v4 = vld [vmem:[%s457_s1] sm:$0xff]  ;;  %s349_s7 = sshll.u32 %s462_s3, 3  ;;  %vm282_vm2 = vcmask 7168  }
   0xf   : > { %s195_s30 = scalar_lea.vmem %s456_s0, %s347_s25  ;;  %v386_v6 = vld [vmem:[%s458_s2] ss:$0 sm:$0xff]  ;;  %s201_s10 = scalar_lea.vmem %s460_s4, %s349_s7 }
  0x10   : > { %v373_v5 = vld [vmem:[%s195_s30] sm:$0xff] }
  0x11   : > { %v387_v15 = vld [vmem:[#allocation2] ss:$0 sm:$0xff] }
  0x12   : > { %252 = vmatpush.bf16.msra.mxu0 %v376_v2 }
  0x16   : > { %253 = vmatpush.bf16.msra.mxu0 %v375_v3 }
  0x1a   : > { %254 = vmatpush.bf16.msra.mxu0 %v374_v4 }
  0x1d   : > { %370 = vmatmul.msk.bf16.vlgmr.msra.gmra.mxu0 %vm243_vm0, %v373_v5 }
  0x9a   : > { %v256_v7 = vpop.f32.mrf.mxu0 }
  0x9b   : > { %v261_v8 = vmax.f32 %v256_v7, 0.0 }
  0x9d   : > { %v267_v9 = vmul.f32 %v386_v6, %v261_v8 }
  0x9f   : > { %v270_v10 = vsel %vm269_vm1, %v267_v9, 0.0 }
  0xa0   : > { %271 = vadd.xlane.f32.xlu0 %v270_v10 }
  0xa2   : > { %v258_v11 = vpop.f32.mrf.mxu0 }
  0xa3   : > { %v262_v12 = vmax.f32 %v258_v11, 0.0 }
  0xa5   : > { %v268_v13 = vmul.f32 %v386_v6, %v262_v12 }
  0xa7   : > { %v273_v14 = vsel %vm269_vm1, %v268_v13, 0.0 }
  0xa8   : > { %274 = vadd.xlane.f32.xlu0 %v273_v14 }
 0x113   : > { %v272_v16 = vpop.xlane.xlu0 %271 }
 0x114   : > { %v280_v17 = vadd.f32 %v387_v15, %v272_v16 }
 0x116   : > { %283 = vst.msk [vmem:[%s201_s10] sm:$0xff] %vm282_vm2, %v280_v17 }
 0x11b   : > { %v275_v18 = vpop.xlane.xlu0 %274 }
 0x11c   : > { %v281_v19 = vadd.f32 %v387_v15, %v275_v18 }
 0x11e   : > { %284 = vst.msk [vmem:[%s201_s10 + $0x8] sm:$0xff] %vm282_vm2, %v281_v19 }
 0x11f PF: > { %s16_s17 = sadd.s32 1, %s394_s17  }
 0x120   : > { %p13_p4 = scmp.ge.s32.totalorder %s16_s17, 6  }
 0x122   :  { %15 = sbr.rel (!%p13_p4) target bundleno = 3 (0x3), region = 66 }

// kernel: temporal_gnn_forward.2
= control target key start
LH: loop header
LB: loop body
LE: loop exit
PB: predicated region body
PF: predicated region fallthrough
CT: control target
= control target key end

     0   :  { %vm41_vm0 = vcmask 130048   ;;  %s343_s7 = smov 16   ;;  %vm266_vm9 = vcmask 125952   ;;  %s466_s3 = inlined_call_operand.vmem [shape: bf16[16,48], index: 3, kind: input, shape index: {}]   ;;  %s467_s4 = inlined_call_operand.vmem [shape: bf16[16,48], index: 4, kind: input, shape index: {}]   ;;  %s468_s1 = inlined_call_operand.vmem [shape: bf16[16,16], index: 1, kind: input, shape index: {}]   ;;  %s469_s2 = inlined_call_operand.vmem [shape: f32[16,16], index: 2, kind: input, shape index: {}]   ;;  %s470_s5 = inlined_call_operand.vmem [shape: f32[1,64], index: 5, kind: input, shape index: {}]   ;;  %s471_s0 = inlined_call_operand.vmem [shape: bf16[64,16], index: 0, kind: input, shape index: {}]   ;;  %s472_s6 = inlined_call_operand.vmem [shape: bf16[64,16], index: 6, kind: output, shape index: {}]  }
   0x1   :  { %v316_v0 = vld [vmem:[%s466_s3] sm:$0xff]  ;;  %v396_v4 = vld [vmem:[%s469_s2 + $0x8] sm:$0xff] }
   0x2   :  { %v317_v1 = vld [vmem:[%s467_s4] sm:$0xff]  ;;  %52 = vmatpush.bf16.msra.mxu0 %v316_v0 }
   0x3   :  { %v315_v2 = vld [vmem:[%s468_s1] sm:$0xff]  ;;  %78 = vmatpush.bf16.msra.mxu1 %v317_v1  ;;  %s340_s1 = smov 112  }
   0x4   :  { %v391_v3 = vld [vmem:[%s469_s2] sm:$0xff]  ;;  %s341_s2 = smov 96  }
   0x5   :  { %v59_v5 = vpack.c.bf16 %v396_v4, %v391_v3  ;;  %v403_v6 = vld [vmem:[%s470_s5] ss:$0 sm:$0xff]  ;;  %287 = vmatmul.msk.bf16.vlgmr.msra.gmra.mxu0 %vm41_vm0, %v315_v2  ;;  %s342_s5 = smov 32  }
   0x6   :  { %133 = vrot.lane.b32.xlu0 %v403_v6, %s340_s1 }
   0x7   :  { %292 = vmatmul.msk.bf16.vlgmr.msra.gmra.mxu1 %vm41_vm0, %v59_v5 }
  0x78   :  { %v134_v7 = vpop.permute.xlu0 %133 }
  0x82   :  { %v54_v12 = vpop.f32.mrf.mxu0 }
  0x83   :  { %v131_v52 = vadd.f32 %v403_v6, %v54_v12 }
  0x84   :  { %v80_v8 = vpop.f32.mrf.mxu1 }
  0x85   :  { %v136_v9 = vadd.f32 %v134_v7, %v80_v8  ;;  %v86_v13 = vadd.f32 %v80_v8, %v54_v12  ;;  %v319_v8 = vld [vmem:[%s471_s0 + $0x8] sm:$0xff] }
  0x87   :  { %140 = vrot.lane.b32.xlu0 %v136_v9, %s341_s2  ;;  %v91_v14 = vadd.f32 %v403_v6, %v86_v13  ;;  %v321_v9 = vld [vmem:[%s471_s0 + $0x18] sm:$0xff] }
  0x89   :  { %v293_v16 = vmul.f32 -1.442695, %v91_v14 }
  0x8a   :  { %v56_v15 = vpop.f32.mrf.mxu0 }
  0x8b   :  { %328 = vpow2.f32 %v293_v16  ;;  %v132_v48 = vadd.f32 %v403_v6, %v56_v15 }
  0x8c   :  { %v82_v10 = vpop.f32.mrf.mxu1 }
  0x8d   :  { %v137_v11 = vadd.f32 %v134_v7, %v82_v10  ;;  %v87_v17 = vadd.f32 %v82_v10, %v56_v15  ;;  %v320_v7 = vld [vmem:[%s471_s0 + $0x10] sm:$0xff] }
  0x8f   :  { %142 = vrot.lane.b32.xlu1 %v137_v11, %s341_s2  ;;  %v92_v18 = vadd.f32 %v403_v6, %v87_v17 }
  0x91   :  { %v294_v19 = vmul.f32 -1.442695, %v92_v18  ;;  %v329_v20 = vpop.eup %328 }
  0x92   :  { %v99_v21 = vadd.f32 1.0, %v329_v20 }
  0x93   :  { %330 = vpow2.f32 %v294_v19 }
  0x94   :  { %332 = vrcp.f32 %v99_v21  ;;  %v112_v32 = vand.u32 2147483648, %v99_v21  ;;  %vm106_vm2 = vweird.f32 %v99_v21  ;;  %v110_v33 = vand.u32 2147483647, %v99_v21 }
  0x96   :  { %v113_v36 = vor.u32 1.1754944e-38, %v112_v32  ;;  %vm111_vm4 = vcmp.eq.f32.partialorder %v110_v33, 8.507059e+37 }
  0x99   :  { %v331_v22 = vpop.eup %330 }
  0x9a   :  { %v100_v23 = vadd.f32 1.0, %v331_v22  ;;  %v333_v24 = vpop.eup %332 }
  0x9b   :  { %v102_v25 = vmul.f32 %v333_v24, %v99_v21  ;;  %vm107_vm1 = vweird.f32 %v333_v24 }
  0x9c   :  { %334 = vrcp.f32 %v100_v23  ;;  %vm108_vm3 = vmor %vm106_vm2, %vm107_vm1  ;;  %v127_v41 = vand.u32 2147483648, %v100_v23  ;;  %vm121_vm6 = vweird.f32 %v100_v23  ;;  %v125_v42 = vand.u32 2147483647, %v100_v23 }
  0x9d   :  { %v103_v26 = vsub.f32 1.0, %v102_v25 }
  0x9e   :  { %v128_v44 = vor.u32 1.1754944e-38, %v127_v41  ;;  %vm126_vm8 = vcmp.eq.f32.partialorder %v125_v42, 8.507059e+37 }
  0x9f   :  { %v104_v28 = vmul.f32 %v333_v24, %v103_v26 }
  0xa1   :  { %v105_v30 = vadd.f32 %v333_v24, %v104_v28 }
  0xa2   :  { %v335_v27 = vpop.eup %334 }
  0xa3   :  { %v117_v29 = vmul.f32 %v335_v27, %v100_v23  ;;  %v109_v34 = vsel %vm108_vm3, %v333_v24, %v105_v30  ;;  %vm122_vm5 = vweird.f32 %v335_v27 }
  0xa4   :  { %v114_v38 = vsel %vm111_vm4, %v113_v36, %v109_v34  ;;  %vm123_vm7 = vmor %vm121_vm6, %vm122_vm5 }
  0xa5   :  { %v118_v31 = vsub.f32 1.0, %v117_v29  ;;  %v160_v57 = vsub.f32 1.0, %v114_v38 }
  0xa7   :  { %v119_v35 = vmul.f32 %v335_v27, %v118_v31 }
  0xa9   :  { %v120_v40 = vadd.f32 %v335_v27, %v119_v35 }
  0xab   :  { %v124_v43 = vsel %vm123_vm7, %v335_v27, %v120_v40 }
  0xac   :  { %v129_v46 = vsel %vm126_vm8, %v128_v44, %v124_v43 }
  0xad   :  { %v161_v60 = vsub.f32 1.0, %v129_v46 }
  0xf9   :  { %v141_v37 = vpop.permute.xlu0 %140 }
  0xfa   :  { %v146_v39 = vmul.f32 %v141_v37, %v114_v38 }
  0xfc   :  { %150 = vrot.lane.b32.xlu1 %v146_v39, %s342_s5 }
 0x101   :  { %v143_v45 = vpop.permute.xlu1 %142 }
 0x102   :  { %v147_v47 = vmul.f32 %v143_v45, %v129_v46 }
 0x104   :  { %174 = vrot.lane.b32.xlu1 %v391_v3, %s343_s7  ;;  %152 = vrot.lane.b32.xlu2 %v147_v47, %s342_s5 }
 0x15e   :  { %v153_v49 = vpop.permute.xlu2 %152 }
 0x15f   :  { %v157_v50 = vadd.f32 %v153_v49, %v132_v48 }
 0x161   :  { %336 = vtanh.f32 %v157_v50 }
 0x167   :  { %v337_v51 = vpop.eup %336 }
 0x168   :  { %166 = vrot.lane.b32.xlu0 %v337_v51, %s340_s1 }
 0x16e   :  { %v151_v53 = vpop.permute.xlu1 %150 }
 0x16f   :  { %v156_v54 = vadd.f32 %v151_v53, %v131_v52 }
 0x171   :  { %338 = vtanh.f32 %v156_v54 }
 0x176   :  { %v175_v58 = vpop.permute.xlu1 %174 }
 0x177   :  { %v339_v55 = vpop.eup %338  ;;  %v180_v63 = vmul.f32 %v175_v58, %v114_v38 }
 0x178   :  { %164 = vrot.lane.b32.xlu2 %v339_v55, %s340_s1 }
 0x180   :  { %176 = vrot.lane.b32.xlu2 %v396_v4, %s343_s7  ;;  %v318_v4 = vld [vmem:[%s471_s0] sm:$0xff] }
 0x1d2   :  { %v165_v56 = vpop.permute.xlu2 %164 }
 0x1d3   :  { %v170_v59 = vmul.f32 %v165_v56, %v160_v57 }
 0x1d5   :  { %v182_v2 = vadd.f32 %v180_v63, %v170_v59 }
 0x1da   :  { %v167_v61 = vpop.permute.xlu0 %166  ;;  %v177_v62 = vpop.permute.xlu2 %176 }
 0x1db   :  { %v171_v0 = vmul.f32 %v167_v61, %v161_v60  ;;  %v181_v1 = vmul.f32 %v177_v62, %v129_v46 }
 0x1dd   :  { %v183_v3 = vadd.f32 %v181_v1, %v171_v0 }
 0x1df   :  { %v192_v5 = vpack.c.bf16 %v183_v3, %v182_v2 }
 0x1e1   :  { %214 = vrot.lane.b32.xlu0 %v192_v5, %s340_s1 }
 0x253   :  { %v215_v6 = vpop.permute.xlu0 %214 }
 0x254   :  { %236 = vmatpush.bf16.msra.mxu2 %v215_v6  ;;  %322 = vmatpush.bf16.msra.mxu3 %v215_v6 }
 0x257   :  { %311 = vmatmul.msk.bf16.vlgmr.msra.gmra.mxu2 %vm41_vm0, %v318_v4  ;;  %313 = vmatmul.msk.bf16.vlgmr.msra.gmra.mxu3 %vm41_vm0, %v320_v7 }
 0x267   :  { %312 = vmatmul.msk.bf16.gmra.mxu2 %vm41_vm0, %v319_v8  ;;  %314 = vmatmul.msk.bf16.gmra.mxu3 %vm41_vm0, %v321_v9 }
 0x2da   :  { %v238_v10 = vpop.f32.mrf.mxu2  ;;  %v248_v11 = vpop.f32.mrf.mxu3 }
 0x2db   :  { %v258_v12 = vpack.c.bf16 %v238_v10, %v238_v10  ;;  %v262_v13 = vpack.c.bf16 %v248_v11, %v248_v11 }
 0x2dd   :  { %267 = vst.msk [vmem:[%s472_s6] sm:$0xf] %vm266_vm9, %v258_v12 }
 0x2de   :  { %271 = vst.msk [vmem:[%s472_s6 + $0x10] sm:$0xf] %vm266_vm9, %v262_v13 }
 0x2e2   :  { %v240_v14 = vpop.f32.mrf.mxu2  ;;  %v250_v15 = vpop.f32.mrf.mxu3 }
 0x2e3   :  { %v259_v16 = vpack.c.bf16 %v240_v14, %v240_v14  ;;  %v263_v17 = vpack.c.bf16 %v250_v15, %v250_v15 }
 0x2e5   :  { %268 = vst.msk [vmem:[%s472_s6 + $0x4] sm:$0xf] %vm266_vm9, %v259_v16 }
 0x2e6   :  { %272 = vst.msk [vmem:[%s472_s6 + $0x14] sm:$0xf] %vm266_vm9, %v263_v17 }
 0x2ea   :  { %v243_v18 = vpop.f32.mrf.mxu2  ;;  %v253_v19 = vpop.f32.mrf.mxu3 }
 0x2eb   :  { %v260_v20 = vpack.c.bf16 %v243_v18, %v243_v18  ;;  %v264_v21 = vpack.c.bf16 %v253_v19, %v253_v19 }
 0x2ed   :  { %269 = vst.msk [vmem:[%s472_s6 + $0x8] sm:$0xf] %vm266_vm9, %v260_v20 }
 0x2ee   :  { %273 = vst.msk [vmem:[%s472_s6 + $0x18] sm:$0xf] %vm266_vm9, %v264_v21 }
 0x2f2   :  { %v245_v22 = vpop.f32.mrf.mxu2  ;;  %v255_v23 = vpop.f32.mrf.mxu3 }
 0x2f3   :  { %v261_v24 = vpack.c.bf16 %v245_v22, %v245_v22  ;;  %v265_v25 = vpack.c.bf16 %v255_v23, %v255_v23 }
 0x2f5   :  { %270 = vst.msk [vmem:[%s472_s6 + $0xc] sm:$0xf] %vm266_vm9, %v261_v24 }
 0x2f6   :  { %274 = vst.msk [vmem:[%s472_s6 + $0x1c] sm:$0xf] %vm266_vm9, %v265_v25 }

</bundles_post_ra>
